<compile_context>
chip_gen: v5e
topology: v5e:2x2
jax: 0.10.0
libtpu: 0.0.40
codegen_flags: <defaults>
</compile_context>

<pallas_src>
import math

import jax
import jax.numpy as jnp
from jax.experimental import pallas as pl
from jax.experimental.pallas import tpu as pltpu


def _onehot_folded_kernel(x_ref, o_ref):
    # x_ref: (tile_rows, R) int32 class ids; R consecutive logical rows per
    #        folded row, laid out along lanes.
    # o_ref: (tile_rows, R*C) folded one-hot output; lane l = r*C + c.
    tr, r_fold = x_ref.shape
    rc = o_ref.shape[-1]
    c = rc // r_fold

    # 0/1 replication matrix rep[r, l] = (l // c == r), built without any
    # vector integer div/mod (range compare of two iotas).
    lane_i = jax.lax.broadcasted_iota(jnp.int32, (r_fold, rc), 1)
    row_i = jax.lax.broadcasted_iota(jnp.int32, (r_fold, rc), 0)
    low = row_i * c
    rep = ((lane_i >= low) & (lane_i < low + c)).astype(jnp.bfloat16)

    # Replicate indices C-wide along lanes on the MXU (store-bound kernel, MXU
    # has slack).  Class ids <= 256 are exact in bf16; f32 accumulation keeps
    # the single nonzero term exact.
    idx_rep = jnp.dot(x_ref[...].astype(jnp.bfloat16), rep,
                      preferred_element_type=jnp.float32)          # (tr, rc)

    # Per-lane class id:  l % c  ==  l - c * (l // c), all exact in f32.
    r_row = jax.lax.broadcasted_iota(jnp.int32, (1, r_fold), 1).astype(jnp.bfloat16)
    base = jnp.dot(r_row, rep, preferred_element_type=jnp.float32) * float(c)
    cls = jax.lax.broadcasted_iota(jnp.int32, (1, rc), 1).astype(jnp.float32) - base

    o_ref[...] = (idx_rep == cls).astype(o_ref.dtype)


def _onehot_wide_kernel(x_ref, o_ref):
    # x_ref: (tile_n, 1) int32 class ids; o_ref: (tile_n, tile_c) output block.
    tile_c = o_ref.shape[-1]
    rel = x_ref[...] - pl.program_id(1) * tile_c          # offset on the tiny block
    lane = jax.lax.broadcasted_iota(jnp.int32, (1, tile_c), 1)
    o_ref[...] = (rel == lane).astype(o_ref.dtype)


def one_hot_pallas(x, num_classes, *, out_dtype=jnp.float32):
    """Pallas equivalent of torch.nn.functional.one_hot(x, num_classes).float().

    out_dtype=jnp.bfloat16 is supported if a downstream consumer tolerates it
    (halves HBM write traffic of this write-bound kernel); default matches the
    PyTorch reference (.float()).
    """
    num_classes = int(num_classes)
    orig_shape = x.shape
    # TODO(synk): int64 labels >= 2**31 would be silently truncated by this cast.
    flat = x.reshape(-1).astype(jnp.int32)
    n = int(flat.shape[0])
    itemsize = jnp.dtype(out_dtype).itemsize
    sub = max(8, 32 // itemsize)              # sublane multiple for out_dtype
    budget = 12 * 1024 * 1024                 # pipeline buffers + temps (v5e-safe)
    vmem_limit = 48 * 1024 * 1024

    # ------------------------ folded, lane-dense path ------------------------
    if num_classes <= 256 and num_classes % 128 != 0:
        c = num_classes
        r0 = 128 // math.gcd(c, 128)
        if r0 * r0 * c <= 256 * 1024:
            fold = r0                         # folded row R*C is a multiple of 128
        else:
            fold = -(-1024 // c)              # ~1024-lane rows, tiny rep matrix
        rc = fold * c

        n_pad = -(-n // fold) * fold
        if n_pad != n:
            # Ragged n: pad indices so (n, C) can be viewed as (n_pad/R, R*C);
            # costs one post-kernel slice of the output (only in this case).
            flat = jnp.pad(flat, (0, n_pad - n))
        n_fold = n_pad // fold
        idx2d = flat.reshape(n_fold, fold)

        # double-buffered out + f32 matmul temp + double-buffered lane-padded index
        per_row = 2 * rc * itemsize + 2 * rc * 4 + 2 * 128 * 4
        tile_rows = max(1, budget // per_row)
        if n_fold * rc * itemsize > (2 << 20):     # big output: >=2 blocks (v7x 2 TCs)
            tile_rows = min(tile_rows, -(-n_fold // 2))
        if tile_rows >= n_fold:
            tile_rows = n_fold                     # single full-extent block
        else:
            tile_rows = min(n_fold, max(sub, (tile_rows // sub) * sub))

        out = pl.pallas_call(
            _onehot_folded_kernel,
            out_shape=jax.ShapeDtypeStruct((n_fold, rc), out_dtype),
            grid_spec=pltpu.PrefetchScalarGridSpec(
                num_scalar_prefetch=0,
                grid=(pl.cdiv(n_fold, tile_rows),),
                in_specs=[pl.BlockSpec((tile_rows, fold), lambda i: (i, 0))],
                out_specs=pl.BlockSpec((tile_rows, rc), lambda i: (i, 0)),
            ),
            compiler_params=pltpu.CompilerParams(
                dimension_semantics=("parallel",),
                vmem_limit_bytes=vmem_limit,
            ),
        )(idx2d)

        out = out.reshape(n_pad, c)                # contiguous -> free metadata reshape
        if n_pad != n:
            out = out[:n]
        return out.reshape(*orig_shape, c)

    # ------------------------------ wide path --------------------------------
    c = num_classes
    tile_c = c if c <= 8192 else 8192              # full-class tiles up to 8192
    # double-buffered out + compare temp + double-buffered lane-padded (rows,1) index
    per_row = 2 * tile_c * itemsize + 4 * tile_c + 2 * 128 * 4
    tile_n = max(1, budget // per_row)
    if n * c * itemsize > (2 << 20):               # big output: >=2 blocks (v7x 2 TCs)
        tile_n = min(tile_n, -(-n // 2))
    if tile_n >= n:
        tile_n = n                                 # single full-extent block
    else:
        tile_n = min(n, max(sub, (tile_n // sub) * sub))

    idx2d = flat.reshape(n, 1)
    out = pl.pallas_call(
        _onehot_wide_kernel,
        out_shape=jax.ShapeDtypeStruct((n, c), out_dtype),
        grid_spec=pltpu.PrefetchScalarGridSpec(
            num_scalar_prefetch=0,
            grid=(pl.cdiv(n, tile_n), pl.cdiv(c, tile_c)),
            in_specs=[pl.BlockSpec((tile_n, 1), lambda i, j: (i, 0))],
            out_specs=pl.BlockSpec((tile_n, tile_c), lambda i, j: (i, j)),
        ),
        compiler_params=pltpu.CompilerParams(
            dimension_semantics=("parallel", "parallel"),
            vmem_limit_bytes=vmem_limit,
        ),
    )(idx2d)
    return out.reshape(*orig_shape, c)


if __name__ == "__main__":
    key = jax.random.PRNGKey(0)
    k1, k2, k3 = jax.random.split(key, 3)

    # Primary case (matches the module's typical use: small class count).
    num_classes = 10
    x = jax.random.randint(k1, (2, 4, 16), 0, num_classes, dtype=jnp.int32)
    y = one_hot_pallas(x, num_classes)
    jax.block_until_ready(y)
    y_ref = jax.nn.one_hot(x, num_classes, dtype=jnp.float32)
    assert y.shape == x.shape + (num_classes,)
    assert y.dtype == jnp.float32
    assert jnp.array_equal(y, y_ref), "folded path mismatch vs jax.nn.one_hot"

    # Ragged row count + odd class count (exercises pad + post-slice, folded path).
    x2 = jax.random.randint(k2, (3, 5), 0, 7, dtype=jnp.int32)
    y2 = one_hot_pallas(x2, 7)
    assert jnp.array_equal(y2, jax.nn.one_hot(x2, 7, dtype=jnp.float32)), \
        "ragged folded path mismatch"

    # Wide path (class axis already lane-dense: multiple of 128).
    x3 = jax.random.randint(k3, (2, 40), 0, 384, dtype=jnp.int32)
    y3 = one_hot_pallas(x3, 384)
    assert jnp.array_equal(y3, jax.nn.one_hot(x3, 384, dtype=jnp.float32)), \
        "wide path mismatch"

    jax.block_until_ready((y2, y3))
    print("KERNEL_OK")
</pallas_src>

<mosaic_0001>
module attributes {stable_mosaic.version = 11 : i64} {
  func.func @_onehot_folded_kernel(%arg0: i32, %arg1: memref<2x64xi32, #tpu.memory_space<vmem>>, %arg2: memref<2x640xf32, #tpu.memory_space<vmem>>) attributes {dimension_semantics = [#tpu.dimension_semantics<parallel>], iteration_bounds = array<i64: 1>, scalar_prefetch = 0 : i64, scratch_operands = 0 : i64, tpu.core_type = #tpu.core_type<tc>, window_params = [{transform_indices = @transform_0, window_bounds = array<i64: 2, 64>}, {transform_indices = @transform_1, window_bounds = array<i64: 2, 640>}]} {
    %0 = tpu.iota {dimensions = array<i32: 1>} : vector<64x640xi32>
    %1 = tpu.iota {dimensions = array<i32: 0>} : vector<64x640xi32>
    %c10_i32 = arith.constant 10 : i32
    %2 = vector.broadcast %c10_i32 : i32 to vector<64x640xi32>
    %3 = arith.muli %1, %2 : vector<64x640xi32>
    %4 = arith.cmpi sge, %0, %3 : vector<64x640xi32>
    %c10_i32_0 = arith.constant 10 : i32
    %5 = vector.broadcast %c10_i32_0 : i32 to vector<64x640xi32>
    %6 = arith.addi %3, %5 : vector<64x640xi32>
    %7 = arith.cmpi slt, %0, %6 : vector<64x640xi32>
    %8 = arith.andi %4, %7 : vector<64x640xi1>
    %9 = arith.extui %8 : vector<64x640xi1> to vector<64x640xi32>
    %10 = arith.sitofp %9 : vector<64x640xi32> to vector<64x640xf32>
    %11 = arith.truncf %10 : vector<64x640xf32> to vector<64x640xbf16>
    %c0 = arith.constant 0 : index
    %c0_1 = arith.constant 0 : index
    %12 = vector.load %arg1[%c0, %c0_1] : memref<2x64xi32, #tpu.memory_space<vmem>>, vector<2x64xi32>
    %13 = arith.sitofp %12 : vector<2x64xi32> to vector<2x64xbf16>
    %cst = arith.constant dense<0.000000e+00> : vector<2x640xf32>
    %14 = tpu.matmul %13, %11, %cst {dimension_numbers = #tpu.dot_dimension_numbers<[1], [0], [0], [1], [0, 0, 1, 1], [], []>} : vector<2x64xbf16>, vector<64x640xbf16>, vector<2x640xf32> -> vector<2x640xf32>
    %15 = tpu.iota {dimensions = array<i32: 1>} : vector<1x64xi32>
    %16 = arith.sitofp %15 : vector<1x64xi32> to vector<1x64xbf16>
    %cst_2 = arith.constant dense<0.000000e+00> : vector<1x640xf32>
    %17 = tpu.matmul %16, %11, %cst_2 {dimension_numbers = #tpu.dot_dimension_numbers<[1], [0], [0], [1], [0, 0, 1, 1], [], []>} : vector<1x64xbf16>, vector<64x640xbf16>, vector<1x640xf32> -> vector<1x640xf32>
    %cst_3 = arith.constant 1.000000e+01 : f32
    %18 = vector.broadcast %cst_3 : f32 to vector<1x640xf32>
    %19 = arith.mulf %17, %18 : vector<1x640xf32>
    %20 = tpu.iota {dimensions = array<i32: 1>} : vector<1x640xi32>
    %21 = arith.sitofp %20 : vector<1x640xi32> to vector<1x640xf32>
    %22 = arith.subf %21, %19 : vector<1x640xf32>
    %23 = vector.broadcast %22 : vector<1x640xf32> to vector<2x640xf32>
    %24 = arith.cmpf oeq, %14, %23 : vector<2x640xf32>
    %25 = arith.extui %24 : vector<2x640xi1> to vector<2x640xi32>
    %26 = arith.sitofp %25 : vector<2x640xi32> to vector<2x640xf32>
    %c0_4 = arith.constant 0 : index
    %c0_5 = arith.constant 0 : index
    %27 = vector.load %arg2[%c0_4, %c0_5] : memref<2x640xf32, #tpu.memory_space<vmem>>, vector<2x640xf32>
    tpu.vector_store %arg2[%c0_4, %c0_5], %26 {strides = array<i32>} : memref<2x640xf32, #tpu.memory_space<vmem>>, vector<2x640xf32>,
    return
  }
  func.func @transform_0(%arg0: i32) -> (i32, i32) {
    %c0_i32 = arith.constant 0 : i32
    %c0_i32_0 = arith.constant 0 : i32
    return %arg0, %c0_i32 : i32, i32
  }
  func.func @transform_1(%arg0: i32) -> (i32, i32) {
    %c0_i32 = arith.constant 0 : i32
    %c0_i32_0 = arith.constant 0 : i32
    return %arg0, %c0_i32 : i32, i32
  }
}

</mosaic_0001>

<bundles_post_ra>
// kernel: tpu_custom_call.1
= control target key start
LH: loop header
LB: loop body
LE: loop exit
PB: predicated region body
PF: predicated region fallthrough
CT: control target
= control target key end

     0   :  { %6 = vsyncpa [#allocation3], 0  ;;  %s1410_s0 = inlined_call_operand.hbm [shape: s32[2,64], index: 0, kind: input, shape index: {}]   ;;  %s1411_s1 = inlined_call_operand.hbm [shape: f32[2,640], index: 1, kind: output, shape index: {}]  }
   0x1   :  { %7 = vsyncpa [#allocation4], 0  ;;  %s13_s8 = sshll.u32 %s1410_s0, 4  ;;  %s675_s9 = smov [#allocation2]   ;;  %v24_v0 = vlaneseq  ;;  %s14_s8 = int_to_ptr.hbm [resolvable:$true] %s13_s8 }
   0x2   :  { %s15_s10 = sshll.u32 %s675_s9, 4  ;;  %s16_s10 = int_to_ptr.vmem [resolvable:$true] %s15_s10 }
   0x3   :  { %18 = dma.hbm_to_vmem [thread:$0]  %s14_s8, 32, %s16_s10, [#allocation3]  }
   0x4   :  { %671 = dma.done.wait [#allocation3], 32  }
   0x5   :  { %672 = vsyncadd [#allocation3], 4294967264  ;;  %v692_v1 = vshrl.u32 %v24_v0, 7  ;;  %v694_v2 = vand.u32 127, %v24_v0  ;;  %v676_v18 = vmov 1.0|1.0  }
   0x6   :  { %v1464_v19 = vmov 0  ;;  %v1468_v22 = vmov 0  ;;  %v1470_v24 = vmov 0  ;;  %v1472_v25 = vmov 0  ;;  %v275_v52 = vld [vmem:[#allocation2] sm:$0x3] }
   0x7   :  { %v37_v3 = vadd.s32 48, %v692_v1  ;;  %v38_v4 = vadd.s32 56, %v692_v1  ;;  %v703_v7 = vadd.s32 128, %v694_v2  ;;  %v35_v10 = vadd.s32 32, %v692_v1  ;;  %s678_s0 = smov [#allocation5]   ;;  %s474_s14 = sshll.u32 %s1411_s1, 4  ;;  %s475_s14 = int_to_ptr.hbm [resolvable:$true] %s474_s14 }
   0x8   :  { %v36_v11 = vadd.s32 40, %v692_v1  ;;  %v722_v12 = vadd.s32 256, %v694_v2  ;;  %v747_v16 = vadd.s32 384, %v694_v2  ;;  %v33_v26 = vadd.s32 16, %v692_v1  ;;  %s472_s11 = sshll.u32 %s678_s0, 4  ;;  %s473_s11 = int_to_ptr.vmem [resolvable:$true] %s472_s11 }
   0x9   :  { %v698_v5 = vmul.u32 10, %v37_v3  ;;  %v700_v6 = vmul.u32 10, %v38_v4  ;;  %v740_v15 = vmul.u32 10, %v35_v10  ;;  %v1474_v27 = vmov 0 }
   0xa   :  { %v749_v17 = vmul.u32 10, %v36_v11  ;;  %v34_v28 = vadd.s32 24, %v692_v1  ;;  %v1476_v29 = vmov 0  ;;  %v1478_v30 = vmov 0 }
   0xb   :  { %vm77_vm0 = vcmp.ge.s32.totalorder %v694_v2, %v698_v5  ;;  %v708_v8 = vadd.s32 10, %v698_v5  ;;  %v711_v9 = vadd.s32 10, %v700_v6  ;;  %vm82_vm1 = vcmp.ge.s32.totalorder %v694_v2, %v700_v6 }
   0xc   :  { %vm78_vm5 = vcmp.ge.s32.totalorder %v703_v7, %v698_v5  ;;  %vm83_vm8 = vcmp.ge.s32.totalorder %v703_v7, %v700_v6  ;;  %vm79_vm12 = vcmp.ge.s32.totalorder %v722_v12, %v698_v5  ;;  %vm84_vm15 = vcmp.ge.s32.totalorder %v722_v12, %v700_v6 }
   0xd   :  { %vm125_vm2 = vcmp.lt.s32.totalorder %v694_v2, %v708_v8  ;;  %vm130_vm3 = vcmp.lt.s32.totalorder %v694_v2, %v711_v9  ;;  %vm126_vm6 = vcmp.lt.s32.totalorder %v703_v7, %v708_v8  ;;  %vm131_vm9 = vcmp.lt.s32.totalorder %v703_v7, %v711_v9 }
   0xe   :  { %vm724_vm4 = vmand %vm77_vm0, %vm125_vm2  ;;  %vm127_vm13 = vcmp.lt.s32.totalorder %v722_v12, %v708_v8  ;;  %vm132_vm0 = vcmp.lt.s32.totalorder %v722_v12, %v711_v9  ;;  %v778_v21 = vadd.s32 10, %v740_v15  ;;  %v795_v23 = vadd.s32 10, %v749_v17 }
   0xf   :  { %vm732_vm7 = vmand %vm82_vm1, %vm130_vm3  ;;  %vm80_vm3 = vcmp.ge.s32.totalorder %v747_v16, %v698_v5  ;;  %v859_v31 = vmul.u32 10, %v33_v26  ;;  %v865_v32 = vmul.u32 10, %v34_v28  ;;  %v1480_v33 = vmov 0 }
  0x10   :  { %vm1413_vm10 = vmpackc.low %vm732_vm7, %vm724_vm4  ;;  %v1482_v34 = vmov 0  ;;  %v1484_v36 = vmov 0  ;;  %v1486_v38 = vmov 0  ;;  %v1488_v39 = vmov 0 }
  0x11   :  { %525 = vmatpush.bf16.msk.msra.mxu0 %vm1413_vm10, %v676_v18  ;;  %vm757_vm11 = vmand %vm78_vm5, %vm126_vm6  ;;  %vm128_vm5 = vcmp.lt.s32.totalorder %v747_v16, %v708_v8  ;;  %vm72_vm10 = vcmp.ge.s32.totalorder %v694_v2, %v749_v17  ;;  %v894_v35 = vadd.s32 10, %v859_v31  ;;  %v911_v37 = vadd.s32 10, %v865_v32 }
  0x12   :  { %v1465_v19 = vsel %vm757_vm11, 4294967295, %v1464_v19  ;;  %vm765_vm14 = vmand %vm83_vm8, %vm131_vm9  ;;  %vm85_vm8 = vcmp.ge.s32.totalorder %v747_v16, %v700_v6  ;;  %vm133_vm9 = vcmp.lt.s32.totalorder %v747_v16, %v711_v9  ;;  %v1490_v40 = vmov 0 }
  0x13   :  { %vm1412_vm1 = vmpackc.low %vm765_vm14, %vm757_vm11  ;;  %v32_v41 = vadd.s32 8, %v692_v1  ;;  %v1492_v42 = vmov 0  ;;  %v1494_v43 = vmov 0  ;;  %v975_v44 = vmul.u32 10, %v692_v1 }
  0x14   :  { %534 = vmatpush.bf16.msk.msra.mxu1 %vm1412_vm1, %v676_v18  ;;  %vm786_vm2 = vmand %vm79_vm12, %vm127_vm13  ;;  %v1496_v46 = vmov 0  ;;  %v1498_v47 = vmov 0  ;;  %v1500_v49 = vmov 0  ;;  %v1502_v51 = vmov 0 }
  0x15   :  { %v1469_v22 = vsel %vm786_vm2, 4294967295, %v1468_v22  ;;  %vm797_vm6 = vmand %vm84_vm15, %vm132_vm0  ;;  %vm67_vm15 = vcmp.ge.s32.totalorder %v694_v2, %v740_v15  ;;  %vm115_vm0 = vcmp.lt.s32.totalorder %v694_v2, %v778_v21  ;;  %v981_v45 = vmul.u32 10, %v32_v41 }
  0x16   :  { %v1471_v24 = vsel %vm797_vm6, 4294967295, %v1470_v24  ;;  %vm1414_vm12 = vmpackc.low %vm797_vm6, %vm786_vm2  ;;  %vm73_vm6 = vcmp.ge.s32.totalorder %v703_v7, %v749_v17  ;;  %v1010_v48 = vadd.s32 10, %v975_v44  ;;  %v1504_v53 = vmov 0 }
  0x17   :  { %543 = vmatpush.bf16.msk.msra.mxu2 %vm1414_vm12, %v676_v18  ;;  %vm815_vm13 = vmand %vm80_vm3, %vm128_vm5  ;;  %vm120_vm3 = vcmp.lt.s32.totalorder %v694_v2, %v795_v23  ;;  %vm116_vm12 = vcmp.lt.s32.totalorder %v703_v7, %v778_v21  ;;  %v1027_v50 = vadd.s32 10, %v981_v45  ;;  %v1506_v54 = vmov 0 }
  0x18   :  { %v1473_v25 = vsel %vm815_vm13, 4294967295, %v1472_v25  ;;  %vm824_vm1 = vmand %vm85_vm8, %vm133_vm9  ;;  %vm68_vm9 = vcmp.ge.s32.totalorder %v703_v7, %v740_v15  ;;  %v276_v55 = vcvt.s32.f32 %v275_v52  ;;  %v1508_v56 = vmov 0 }
  0x19   :  { %v1475_v27 = vsel %vm824_vm1, 4294967295, %v1474_v27  ;;  %vm1417_vm5 = vmpackc.low %vm824_vm1, %vm815_vm13  ;;  %vm74_vm1 = vcmp.ge.s32.totalorder %v722_v12, %v749_v17  ;;  %v1512_v59 = vmov 0  ;;  %v1514_v60 = vmov 0 }
  0x1a   :  { %552 = vmatpush.bf16.msk.msra.mxu3 %vm1417_vm5, %v676_v18  ;;  %vm843_vm8 = vmand %vm67_vm15, %vm115_vm0  ;;  %vm121_vm5 = vcmp.lt.s32.totalorder %v703_v7, %v795_v23  ;;  %vm69_vm0 = vcmp.ge.s32.totalorder %v722_v12, %v740_v15  ;;  %v1093_v58 = vpack.c.bf16 %v276_v55, %v276_v55  ;;  %vm54_vm11 = vcmp.ge.s32.totalorder %v722_v12, %v981_v45 }
  0x1b   :  { %v1477_v29 = vsel %vm843_vm8, 4294967295, %v1476_v29  ;;  %vm851_vm2 = vmand %vm72_vm10, %vm120_vm3  ;;  %vm117_vm3 = vcmp.lt.s32.totalorder %v722_v12, %v778_v21  ;;  %v1122_v61 = vadd.s32 512, %v694_v2  ;;  %v1516_v62 = vmov 0 }
  0x1c   :  { %v1479_v30 = vsel %vm851_vm2, 4294967295, %v1478_v30  ;;  %vm1420_vm15 = vmpackc.low %vm851_vm2, %vm843_vm8  ;;  %vm62_vm2 = vcmp.ge.s32.totalorder %v694_v2, %v865_v32  ;;  %v1518_v63 = vmov 0  ;;  %v1521_v0 = vmov 0 }
  0x1d   :  { %527 = vmatpush.bf16.msk.msra.mxu0 %vm1420_vm15, %v676_v18  ;;  %vm873_vm10 = vmand %vm68_vm9, %vm116_vm12  ;;  %vm122_vm15 = vcmp.lt.s32.totalorder %v722_v12, %v795_v23  ;;  %vm118_vm9 = vcmp.lt.s32.totalorder %v747_v16, %v778_v21  ;;  %v1523_v1 = vmov 0  ;;  %v1531_v3 = vmov 0 }
  0x1e   :  { %v1481_v33 = vsel %vm873_vm10, 4294967295, %v1480_v33  ;;  %vm881_vm13 = vmand %vm73_vm6, %vm121_vm5  ;;  %vm70_vm5 = vcmp.ge.s32.totalorder %v747_v16, %v740_v15  ;;  %v422_v28 = vcvt.s32.f32 %v703_v7 }
  0x1f   :  { %v1483_v34 = vsel %vm881_vm13, 4294967295, %v1482_v34  ;;  %vm1422_vm12 = vmpackc.low %vm881_vm13, %vm873_vm10  ;;  %vm105_vm10 = vcmp.lt.s32.totalorder %v694_v2, %v894_v35 }
  0x20   :  { %536 = vmatpush.bf16.msk.msra.mxu1 %vm1422_vm12, %v676_v18  ;;  %vm902_vm6 = vmand %vm69_vm0, %vm117_vm3  ;;  %vm75_vm12 = vcmp.ge.s32.totalorder %v747_v16, %v749_v17  ;;  %vm123_vm0 = vcmp.lt.s32.totalorder %v747_v16, %v795_v23 }
  0x21   :  { %v1485_v36 = vsel %vm902_vm6, 4294967295, %v1484_v36  ;;  %vm913_vm8 = vmand %vm74_vm1, %vm122_vm15  ;;  %vm57_vm15 = vcmp.ge.s32.totalorder %v694_v2, %v859_v31 }
  0x22   :  { %v1487_v38 = vsel %vm913_vm8, 4294967295, %v1486_v38  ;;  %vm1426_vm3 = vmpackc.low %vm913_vm8, %vm902_vm6  ;;  %vm63_vm8 = vcmp.ge.s32.totalorder %v703_v7, %v865_v32 }
  0x23   :  { %545 = vmatpush.bf16.msk.msra.mxu2 %vm1426_vm3, %v676_v18  ;;  %vm931_vm1 = vmand %vm70_vm5, %vm118_vm9  ;;  %vm110_vm3 = vcmp.lt.s32.totalorder %v694_v2, %v911_v37  ;;  %vm58_vm9 = vcmp.ge.s32.totalorder %v703_v7, %v859_v31 }
  0x24   :  { %v1489_v39 = vsel %vm931_vm1, 4294967295, %v1488_v39  ;;  %vm939_vm13 = vmand %vm75_vm12, %vm123_vm0  ;;  %vm106_vm0 = vcmp.lt.s32.totalorder %v703_v7, %v894_v35 }
  0x25   :  { %v1491_v40 = vsel %vm939_vm13, 4294967295, %v1490_v40  ;;  %vm1429_vm5 = vmpackc.low %vm939_vm13, %vm931_vm1  ;;  %vm64_vm13 = vcmp.ge.s32.totalorder %v722_v12, %v865_v32 }
  0x26   :  { %554 = vmatpush.bf16.msk.msra.mxu3 %vm1429_vm5, %v676_v18  ;;  %vm958_vm12 = vmand %vm57_vm15, %vm105_vm10  ;;  %vm111_vm5 = vcmp.lt.s32.totalorder %v703_v7, %v911_v37  ;;  %vm107_vm15 = vcmp.lt.s32.totalorder %v722_v12, %v894_v35 }
  0x27   :  { %v1493_v42 = vsel %vm958_vm12, 4294967295, %v1492_v42  ;;  %vm966_vm6 = vmand %vm62_vm2, %vm110_vm3  ;;  %vm59_vm3 = vcmp.ge.s32.totalorder %v722_v12, %v859_v31 }
  0x28   :  { %v1495_v43 = vsel %vm966_vm6, 4294967295, %v1494_v43  ;;  %vm1432_vm10 = vmpackc.low %vm966_vm6, %vm958_vm12  ;;  %vm52_vm6 = vcmp.ge.s32.totalorder %v694_v2, %v981_v45 }
  0x29   :  { %529 = vmatpush.bf16.msk.msra.mxu0 %vm1432_vm10, %v676_v18  ;;  %vm989_vm2 = vmand %vm58_vm9, %vm106_vm0  ;;  %vm112_vm10 = vcmp.lt.s32.totalorder %v722_v12, %v911_v37  ;;  %vm108_vm0 = vcmp.lt.s32.totalorder %v747_v16, %v894_v35 }
  0x2a   :  { %v1497_v46 = vsel %vm989_vm2, 4294967295, %v1496_v46  ;;  %vm997_vm1 = vmand %vm63_vm8, %vm111_vm5  ;;  %vm60_vm5 = vcmp.ge.s32.totalorder %v747_v16, %v859_v31 }
  0x2b   :  { %v1499_v47 = vsel %vm997_vm1, 4294967295, %v1498_v47  ;;  %vm1434_vm9 = vmpackc.low %vm997_vm1, %vm989_vm2  ;;  %vm95_vm2 = vcmp.lt.s32.totalorder %v694_v2, %v1010_v48 }
  0x2c   :  { %538 = vmatpush.bf16.msk.msra.mxu1 %vm1434_vm9, %v676_v18  ;;  %vm1018_vm8 = vmand %vm59_vm3, %vm107_vm15  ;;  %vm65_vm9 = vcmp.ge.s32.totalorder %v747_v16, %v865_v32  ;;  %vm113_vm3 = vcmp.lt.s32.totalorder %v747_v16, %v911_v37 }
  0x2d   :  { %v1501_v49 = vsel %vm1018_vm8, 4294967295, %v1500_v49  ;;  %vm1029_vm12 = vmand %vm64_vm13, %vm112_vm10  ;;  %vm47_vm10 = vcmp.ge.s32.totalorder %v694_v2, %v975_v44 }
  0x2e   :  { %v1503_v51 = vsel %vm1029_vm12, 4294967295, %v1502_v51  ;;  %vm1438_vm15 = vmpackc.low %vm1029_vm12, %vm1018_vm8  ;;  %vm53_vm12 = vcmp.ge.s32.totalorder %v703_v7, %v981_v45 }
  0x2f   :  { %547 = vmatpush.bf16.msk.msra.mxu2 %vm1438_vm15, %v676_v18  ;;  %vm1047_vm13 = vmand %vm60_vm5, %vm108_vm0  ;;  %vm100_vm15 = vcmp.lt.s32.totalorder %v694_v2, %v1027_v50  ;;  %vm48_vm0 = vcmp.ge.s32.totalorder %v703_v7, %v975_v44 }
  0x30   :  { %v1505_v53 = vsel %vm1047_vm13, 4294967295, %v1504_v53  ;;  %vm1055_vm1 = vmand %vm65_vm9, %vm113_vm3  ;;  %vm96_vm3 = vcmp.lt.s32.totalorder %v703_v7, %v1010_v48 }
  0x31   :  { %v1507_v54 = vsel %vm1055_vm1, 4294967295, %v1506_v54  ;;  %vm1441_vm5 = vmpackc.low %vm1055_vm1, %vm1047_vm13  ;;  %vm1449_vm13 = vcmask 523264  }
  0x32   :  { %556 = vmatpush.bf16.msk.msra.mxu3 %vm1441_vm5, %v676_v18  ;;  %vm1073_vm9 = vmand %vm47_vm10, %vm95_vm2  ;;  %vm101_vm5 = vcmp.lt.s32.totalorder %v703_v7, %v1027_v50  ;;  %vm97_vm10 = vcmp.lt.s32.totalorder %v722_v12, %v1010_v48  ;;  %v424_v7 = vcvt.s32.f32 %v747_v16 }
  0x33   :  { %v1509_v56 = vsel %vm1073_vm9, 4294967295, %v1508_v56  ;;  %vm1081_vm8 = vmand %vm52_vm6, %vm100_vm15  ;;  %vm49_vm15 = vcmp.ge.s32.totalorder %v722_v12, %v975_v44 }
  0x34   :  { %vm1445_vm2 = vmpackc.low %vm1081_vm8, %vm1073_vm9 }
  0x35   :  { %531 = vmatpush.bf16.msk.msra.mxu0 %vm1445_vm2, %v676_v18  ;;  %vm1101_vm6 = vmand %vm48_vm0, %vm96_vm3  ;;  %vm102_vm0 = vcmp.lt.s32.totalorder %v722_v12, %v1027_v50  ;;  %vm98_vm2 = vcmp.lt.s32.totalorder %v747_v16, %v1010_v48 }
  0x36   :  { %v1513_v59 = vsel %vm1101_vm6, 4294967295, %v1512_v59  ;;  %vm1109_vm1 = vmand %vm53_vm12, %vm101_vm5  ;;  %vm50_vm5 = vcmp.ge.s32.totalorder %v747_v16, %v975_v44 }
  0x37   :  { %v1515_v60 = vsel %vm1109_vm1, 4294967295, %v1514_v60  ;;  %vm1447_vm3 = vmpackc.low %vm1109_vm1, %vm1101_vm6  ;;  %vm1550_vm6 = vnez %v1485_v36 }
  0x38   :  { %540 = vmatpush.bf16.msk.msra.mxu1 %vm1447_vm3, %v676_v18  ;;  %vm1130_vm12 = vmand %vm49_vm15, %vm97_vm10  ;;  %532 = vmatmul.msk.bf16.vlgmr.msra.gmra.mxu0 %vm1449_vm13, %v1093_v58  ;;  %vm55_vm3 = vcmp.ge.s32.totalorder %v747_v16, %v981_v45  ;;  %vm103_vm15 = vcmp.lt.s32.totalorder %v747_v16, %v1027_v50 }
  0x39   :  { %v1517_v62 = vsel %vm1130_vm12, 4294967295, %v1516_v62  ;;  %vm1140_vm9 = vmand %vm54_vm11, %vm102_vm0 }
  0x3a   :  { %v1519_v63 = vsel %vm1140_vm9, 4294967295, %v1518_v63  ;;  %vm1520_vm10 = vmpackc.low %vm732_vm7, %vm724_vm4  ;;  %vm81_vm4 = vcmp.ge.s32.totalorder %v1122_v61, %v698_v5  ;;  %vm129_vm7 = vcmp.lt.s32.totalorder %v1122_v61, %v708_v8  ;;  %v1542_v5 = vmov 0 }
  0x3b   :  { %vm1448_vm11 = vmpackc.low %vm1140_vm9, %vm1130_vm12  ;;  %541 = vmatmul.msk.bf16.vlgmr.msra.gmra.mxu1 %vm1449_vm13, %v1093_v58  ;;  %vm1528_vm12 = vnez %v1477_v29  ;;  %v1279_v8 = vcvt.s32.f32 %v694_v2  ;;  %v423_v29 = vcvt.s32.f32 %v722_v12 }
  0x3c   :  { %570 = vmatpush.bf16.msk.msrb.mxu1 %vm1520_vm10, %v676_v18  ;;  %549 = vmatpush.bf16.msk.msra.mxu2 %vm1448_vm11, %v676_v18  ;;  %vm1164_vm0 = vmand %vm50_vm5, %vm98_vm2  ;;  %vm86_vm11 = vcmp.ge.s32.totalorder %v1122_v61, %v700_v6  ;;  %vm134_vm2 = vcmp.lt.s32.totalorder %v1122_v61, %v711_v9  ;;  %vm1525_vm5 = vnez %v1465_v19 }
  0x3d   :  { %v1522_v0 = vsel %vm1164_vm0, 4294967295, %v1521_v0  ;;  %vm1174_vm10 = vmand %vm55_vm3, %vm103_vm15  ;;  %vm1527_vm15 = vnez %v1479_v30  ;;  %v348_v11 = vpack.c.bf16 %v1279_v8, %v1279_v8 }
  0x3e   :  { %v1524_v1 = vsel %vm1174_vm10, 4294967295, %v1523_v1  ;;  %vm1526_vm13 = vmpackc.low %vm765_vm14, %vm1525_vm5  ;;  %vm1530_vm14 = vcmask 523264   ;;  %vm71_vm5 = vcmp.ge.s32.totalorder %v1122_v61, %v740_v15 }
  0x3f   :  { %vm1452_vm3 = vmpackc.low %vm1174_vm10, %vm1164_vm0  ;;  %550 = vmatmul.msk.bf16.vlgmr.msra.gmra.mxu2 %vm1530_vm14, %v1093_v58  ;;  %vm1539_vm0 = vnez %v1481_v33  ;;  %v425_v33 = vcvt.s32.f32 %v1122_v61 }
  0x40   :  { %579 = vmatpush.bf16.msk.msrb.mxu2 %vm1526_vm13, %v676_v18  ;;  %vm1529_vm9 = vmpackc.low %vm1527_vm15, %vm1528_vm12  ;;  %558 = vmatpush.bf16.msk.msra.mxu3 %vm1452_vm3, %v676_v18  ;;  %vm1535_vm15 = vnez %v1471_v24  ;;  %vm1536_vm3 = vnez %v1469_v22 }
  0x41   :  { %572 = vmatpush.bf16.msk.msrb.mxu1 %vm1529_vm9, %v676_v18  ;;  %vm1206_vm13 = vmand %vm81_vm4, %vm129_vm7  ;;  %vm119_vm9 = vcmp.lt.s32.totalorder %v1122_v61, %v778_v21  ;;  %vm76_vm4 = vcmp.ge.s32.totalorder %v1122_v61, %v749_v17  ;;  %vm124_vm7 = vcmp.lt.s32.totalorder %v1122_v61, %v795_v23 }
  0x42   :  { %v1532_v3 = vsel %vm1206_vm13, 4294967295, %v1531_v3  ;;  %vm1214_vm12 = vmand %vm86_vm11, %vm134_vm2  ;;  %vm1538_vm2 = vnez %v1483_v34 }
  0x43   :  { %vm1537_vm14 = vmpackc.low %vm1535_vm15, %vm1536_vm3  ;;  %vm1541_vm3 = vcmask 523264  }
  0x44   :  { %588 = vmatpush.bf16.msk.msrb.mxu3 %vm1537_vm14, %v676_v18  ;;  %vm1455_vm11 = vmpackc.low %vm1214_vm12, %vm1206_vm13  ;;  %vm61_vm14 = vcmp.ge.s32.totalorder %v1122_v61, %v859_v31 }
  0x45   :  { %vm1540_vm10 = vmpackc.low %vm1538_vm2, %vm1539_vm0  ;;  %559 = vmatmul.msk.bf16.vlgmr.msra.gmra.mxu3 %vm1541_vm3, %v1093_v58  ;;  %561 = vmatpush.bf16.msk.msrb.mxu0 %vm1455_vm11, %v676_v18  ;;  %vm109_vm0 = vcmp.lt.s32.totalorder %v1122_v61, %v894_v35  ;;  %vm66_vm2 = vcmp.ge.s32.totalorder %v1122_v61, %v865_v32  ;;  %vm114_vm3 = vcmp.lt.s32.totalorder %v1122_v61, %v911_v37 }
  0x46   :  { %581 = vmatpush.bf16.msk.msrb.mxu2 %vm1540_vm10, %v676_v18  ;;  %vm1246_vm15 = vmand %vm71_vm5, %vm119_vm9  ;;  %vm1546_vm5 = vnez %v1495_v43  ;;  %vm1547_vm9 = vnez %v1493_v42 }
  0x47   :  { %v1543_v5 = vsel %vm1246_vm15, 4294967295, %v1542_v5  ;;  %vm1254_vm10 = vmand %vm76_vm4, %vm124_vm7  ;;  %vm1549_vm7 = vnez %v1487_v38  ;;  %vm51_vm4 = vcmp.ge.s32.totalorder %v1122_v61, %v975_v44 }
  0x48   :  { %vm1548_vm11 = vmpackc.low %vm1546_vm5, %vm1547_vm9  ;;  %vm1555_vm5 = vnez %v1497_v46 }
  0x49   :  { %574 = vmatpush.bf16.msk.msrb.mxu1 %vm1548_vm11, %v676_v18  ;;  %vm1551_vm1 = vmpackc.low %vm1549_vm7, %vm1550_vm6  ;;  %vm1554_vm11 = vnez %v1499_v47  ;;  %vm104_vm7 = vcmp.lt.s32.totalorder %v1122_v61, %v1027_v50 }
  0x4a   :  { %590 = vmatpush.bf16.msk.msrb.mxu3 %vm1551_vm1, %v676_v18  ;;  %vm1281_vm13 = vmand %vm61_vm14, %vm109_vm0  ;;  %vm99_vm1 = vcmp.lt.s32.totalorder %v1122_v61, %v1010_v48  ;;  %vm56_vm0 = vcmp.ge.s32.totalorder %v1122_v61, %v981_v45  ;;  %v677_v48 = vmov 0.0  }
  0x4b   :  { %vm1556_vm9 = vmpackc.low %vm1554_vm11, %vm1555_vm5  ;;  %vm1560_vm5 = vnez %v1509_v56  ;;  %vm1569_vm11 = vnez %v1515_v60 }
  0x4c   :  { %583 = vmatpush.bf16.msk.msrb.mxu2 %vm1556_vm9, %v676_v18  ;;  %vm1557_vm6 = vmpackc.low %vm1254_vm10, %vm1246_vm15  ;;  %vm1563_vm9 = vnez %v1501_v49 }
  0x4d   :  { %563 = vmatpush.bf16.msk.msrb.mxu0 %vm1557_vm6, %v676_v18  ;;  %vm1301_vm14 = vmand %vm66_vm2, %vm114_vm3  ;;  %vm1562_vm3 = vnez %v1503_v51 }
  0x4e   :  { %vm1561_vm2 = vmpackc.low %vm1081_vm8, %vm1560_vm5  ;;  %vm1567_vm8 = vnez %v1532_v3 }
  0x4f   :  { %576 = vmatpush.bf16.msk.msrb.mxu1 %vm1561_vm2, %v676_v18  ;;  %vm1564_vm6 = vmpackc.low %vm1562_vm3, %vm1563_vm9  ;;  %vm1570_vm3 = vnez %v1513_v59 }
  0x50   :  { %592 = vmatpush.bf16.msk.msrb.mxu3 %vm1564_vm6, %v676_v18  ;;  %vm1325_vm15 = vmand %vm51_vm4, %vm99_vm1  ;;  %vm1576_vm6 = vcmask 523264  }
  0x51   :  { %vm1568_vm5 = vmpackc.low %vm1214_vm12, %vm1567_vm8  ;;  %vm1573_vm12 = vnez %v1519_v63 }
  0x52   :  { %vm144_vm2 = vmand %vm56_vm0, %vm104_vm7  ;;  %vm1574_vm0 = vnez %v1517_v62  ;;  %577 = vmatmul.msk.bf16.vlgmr.msrb.gmra.mxu1 %vm1576_vm6, %v348_v11 }
  0x53   :  { %606 = vmatpush.bf16.msk.msra.mxu1 %vm1568_vm5, %v676_v18  ;;  %vm1571_vm4 = vmpackc.low %vm1569_vm11, %vm1570_vm3  ;;  %vm1577_vm11 = vnez %v1543_v5 }
  0x54   :  { %585 = vmatpush.bf16.msk.msrb.mxu2 %vm1571_vm4, %v676_v18  ;;  %vm1572_vm1 = vmpackc.low %vm1301_vm14, %vm1281_vm13  ;;  %vm1592_vm13 = vnez %v1524_v1  ;;  %vm1593_vm14 = vnez %v1522_v0 }
  0x55   :  { %565 = vmatpush.bf16.msk.msrb.mxu0 %vm1572_vm1, %v676_v18  ;;  %vm566_vm9 = vmpackc.low %vm144_vm2, %vm1325_vm15  ;;  %vm1580_vm15 = vnez %v1475_v27  ;;  %vm1581_vm2 = vnez %v1473_v25 }
  0x56   :  { %vm1575_vm7 = vmpackc.low %vm1573_vm12, %vm1574_vm0  ;;  %vm1586_vm12 = vnez %v1491_v40  ;;  %vm1587_vm0 = vnez %v1489_v39 }
  0x57   :  { %594 = vmatpush.bf16.msk.msrb.mxu3 %vm1575_vm7, %v676_v18  ;;  %vm1578_vm8 = vmpackc.low %vm1254_vm10, %vm1577_vm11  ;;  %vm1590_vm11 = vnez %v1505_v53 }
  0x58   :  { %608 = vmatpush.bf16.msk.msra.mxu1 %vm1578_vm8, %v676_v18  ;;  %vm1579_vm5 = vmmov %vm1576_vm6  ;;  %vm1589_vm6 = vnez %v1507_v54 }
  0x59   :  { %567 = vmatpush.bf16.msk.msrb.mxu0 %vm566_vm9, %v676_v18  ;;  %586 = vmatmul.msk.bf16.vlgmr.msrb.gmra.mxu2 %vm1579_vm5, %v348_v11  ;;  %vm1582_vm3 = vmpackc.low %vm1580_vm15, %vm1581_vm2 }
  0x5a   :  { %vm1583_vm4 = vmmov %vm1579_vm5 }
  0x5b   :  { %vm1584_vm10 = vmmov %vm1572_vm1 }
  0x5c   :  { %568 = vmatmul.msk.bf16.vlgmr.msrb.gmra.mxu0 %vm1583_vm4, %v1093_v58  ;;  %610 = vmatpush.bf16.msk.msra.mxu1 %vm1584_vm10, %v676_v18  ;;  %vm1585_vm1 = vmmov %vm1583_vm4 }
  0x5d   :  { %597 = vmatpush.bf16.msk.msra.mxu0 %vm1582_vm3, %v676_v18  ;;  %595 = vmatmul.msk.bf16.vlgmr.msrb.gmra.mxu3 %vm1585_vm1, %v348_v11  ;;  %vm1588_vm7 = vmpackc.low %vm1586_vm12, %vm1587_vm0  ;;  %vm458_vm12 = vcmask 1041408   ;;  %vm460_vm0 = vcmask 1045508  }
  0x5e   :  { %vm1591_vm8 = vmpackc.low %vm1589_vm6, %vm1590_vm11 }
  0x5f   :  { %vm1594_vm5 = vmpackc.low %vm1592_vm13, %vm1593_vm14 }
  0x60   :  { %612 = vmatpush.bf16.msk.msra.mxu1 %vm566_vm9, %v676_v18  ;;  %vm1595_vm15 = vmmov %vm1585_vm1 }
  0x61   :  { %599 = vmatpush.bf16.msk.msra.mxu0 %vm1588_vm7, %v676_v18  ;;  %vm1596_vm2 = vmmov %vm1585_vm1  ;;  %vm462_vm7 = vcmask 1043456  }
  0x63   :  { %613 = vmatmul.msk.bf16.vlgmr.msra.gmra.mxu1 %vm1595_vm15, %v348_v11 }
  0x65   :  { %601 = vmatpush.bf16.msk.msra.mxu0 %vm1591_vm8, %v676_v18 }
  0x69   :  { %603 = vmatpush.bf16.msk.msra.mxu0 %vm1594_vm5, %v676_v18 }
  0x6c   :  { %604 = vmatmul.msk.bf16.vlgmr.msra.gmra.mxu0 %vm1596_vm2, %v348_v11 }
  0xb5   :  { %v291_v13 = vpop.f32.mrf.mxu0 }
  0xb8   :  { %v304_v14 = vpop.f32.mrf.mxu1 }
  0xbd   :  { %v293_v15 = vpop.f32.mrf.mxu0 }
  0xc0   :  { %v306_v17 = vpop.f32.mrf.mxu1 }
  0xc2   :  { %v317_v19 = vpop.f32.mrf.mxu2 }
  0xc8   :  { %v330_v20 = vpop.f32.mrf.mxu3 }
  0xca   :  { %v319_v22 = vpop.f32.mrf.mxu2 }
  0xcf   :  { %v361_v21 = vpop.f32.mrf.mxu1 }
  0xd0   :  { %v332_v23 = vpop.f32.mrf.mxu3  ;;  %v417_v34 = vmul.f32 10.0, %v361_v21 }
  0xd2   :  { %v426_v41 = vsub.f32 %v1279_v8, %v417_v34 }
  0xd4   :  { %v431_v46 = vperm.slane %v426_v41, 0 }
  0xd6   :  { %vm436_vm10 = vcmp.eq.f32.partialorder %v291_v13, %v431_v46 }
  0xd7   :  { %v363_v25 = vpop.f32.mrf.mxu1  ;;  %v614_v58 = vsel %vm436_vm10, 1.0, %v677_v48 }
  0xd9   :  { %v343_v24 = vpop.f32.mrf.mxu0 }
  0xdc   :  { %v374_v26 = vpop.f32.mrf.mxu2 }
  0xdd   :  { %v418_v27 = vmul.f32 10.0, %v374_v26 }
  0xdf   :  { %v427_v32 = vsub.f32 %v422_v28, %v418_v27 }
  0xe0   :  { %v387_v18 = vpop.f32.mrf.mxu3  ;;  %v413_v36 = vpop.f32.mrf.mxu1 }
  0xe1   :  { %v419_v30 = vmul.f32 10.0, %v387_v18  ;;  %v345_v31 = vpop.f32.mrf.mxu0  ;;  %v421_v38 = vmul.f32 10.0, %v413_v36  ;;  %v432_v39 = vperm.slane %v427_v32, 0 }
  0xe3   :  { %v428_v35 = vsub.f32 %v423_v29, %v419_v30  ;;  %v430_v40 = vsub.f32 %v425_v33, %v421_v38  ;;  %vm437_vm9 = vcmp.eq.f32.partialorder %v304_v14, %v432_v39 }
  0xe4   :  { %v376_v37 = vpop.f32.mrf.mxu2  ;;  %v615_v51 = vsel %vm437_vm9, 1.0, %v677_v48 }
  0xe5   :  { %v433_v42 = vperm.slane %v428_v35, 0  ;;  %v435_v12 = vperm.slane %v430_v40, 0  ;;  %v455_v54 = vrot.slane %v615_v51, 6 }
  0xe7   :  { %vm440_vm3 = vcmp.eq.f32.partialorder %v343_v24, %v435_v12  ;;  %vm438_vm4 = vcmp.eq.f32.partialorder %v317_v19, %v433_v42  ;;  %v459_v59 = vsel %vm458_vm12, %v614_v58, %v455_v54 }
  0xe8   :  { %v389_v43 = vpop.f32.mrf.mxu3  ;;  %v618_v49 = vsel %vm440_vm3, 1.0, %v677_v48  ;;  %v415_v50 = vpop.f32.mrf.mxu1  ;;  %v616_v53 = vsel %vm438_vm4, 1.0, %v677_v48 }
  0xe9   :  { %v400_v44 = vpop.f32.mrf.mxu0  ;;  %466 = vst [vmem:[#allocation5 + $0x8] sm:$0x3] %v618_v49  ;;  %v456_v56 = vrot.slane %v616_v53, 4 }
  0xea   :  { %v420_v45 = vmul.f32 10.0, %v400_v44 }
  0xec   :  { %v429_v47 = vsub.f32 %v424_v7, %v420_v45 }
  0xee   :  { %v434_v52 = vperm.slane %v429_v47, 0 }
  0xf0   :  { %vm439_vm1 = vcmp.eq.f32.partialorder %v330_v20, %v434_v52 }
  0xf1   :  { %v617_v55 = vsel %vm439_vm1, 1.0, %v677_v48  ;;  %v402_v16 = vpop.f32.mrf.mxu0 }
  0xf2   :  { %v457_v57 = vrot.slane %v617_v55, 2 }
  0xf4   :  { %v461_v60 = vsel %vm460_vm0, %v456_v56, %v457_v57 }
  0xf5   :  { %v463_v61 = vsel %vm462_vm7, %v459_v59, %v461_v60 }
  0xf6   :  { %465 = vst [vmem:[#allocation5] sm:$0xff] %v463_v61 }
  0xf7   :  { %477 = dma.vmem_to_hbm [thread:$0]  %s473_s11, 160, %s475_s14, [#allocation4]  }
  0xf8   :  { %673 = dma.done.wait [#allocation4], 160  }
  0xf9   :  { %674 = vsyncadd [#allocation4], 4294967136 }
  0xfa   :  { %482 = vsyncpa [#allocation3], 1 }
  0xfb   :  { %483 = vsyncpa [#allocation4], 1 }

</bundles_post_ra>
